<compile_context>
chip_gen: v6e
topology: v6e:2x2x1
jax: 0.10.0
libtpu: 0.0.40
codegen_flags: <defaults>
</compile_context>

<pallas_src>
import numpy as np
import jax
import jax.numpy as jnp
from jax.experimental import pallas as pl
from jax.experimental.pallas import tpu as pltpu


# --------------------------------------------------------------------------
# Pallas kernel: one (rows, cols) tile of y = x * scale_row + shift_row
# --------------------------------------------------------------------------
def _frozen_bn_kernel(x_ref, s_ref, b_ref, o_ref):
    # x: (TR, TC) tile; s, b: (TR, 1) per-row scale/shift, broadcast across the lane axis.
    o_ref[...] = (x_ref[...] * s_ref[...] + b_ref[...]).astype(o_ref.dtype)


def _pick_tile(dim, max_tile):
    # A block equal to the full dim is always layout-legal; otherwise use max_tile
    # (a multiple of 8 / 128) and let Pallas mask the ragged edge block.
    return dim if dim <= max_tile else max_tile


# --------------------------------------------------------------------------
# Wrapper: FrozenBatchNorm2d.forward
# --------------------------------------------------------------------------
def frozen_batch_norm_2d(x_nchw, weight, bias, running_mean, running_var, eps=1e-5,
                         *, row_tile=256, col_tile=2048):
    """x: (N, C, H, W). Returns x * scale + shift with frozen per-channel statistics."""
    N, C, H, W = x_nchw.shape

    # Fold frozen stats into a per-channel affine, exactly as the PyTorch module does.
    scale = weight.astype(jnp.float32) * jax.lax.rsqrt(running_var.astype(jnp.float32) + eps)
    shift = bias.astype(jnp.float32) - running_mean.astype(jnp.float32) * scale

    R, L = N * C, H * W
    x2 = x_nchw.reshape(R, L)                                   # channels -> sublanes, H*W -> lanes
    s2 = jnp.tile(scale, N).reshape(R, 1).astype(x2.dtype)      # per-row scale  (tiny)
    b2 = jnp.tile(shift, N).reshape(R, 1).astype(x2.dtype)      # per-row shift  (tiny)

    tr = _pick_tile(R, row_tile)     # row_tile is a multiple of 8
    tc = _pick_tile(L, col_tile)     # col_tile is a multiple of 128
    grid = (pl.cdiv(R, tr), pl.cdiv(L, tc))

    out = pl.pallas_call(
        _frozen_bn_kernel,
        out_shape=jax.ShapeDtypeStruct((R, L), x2.dtype),
        grid=grid,
        in_specs=[
            pl.BlockSpec((tr, tc), lambda i, j: (i, j)),
            pl.BlockSpec((tr, 1), lambda i, j: (i, 0)),
            pl.BlockSpec((tr, 1), lambda i, j: (i, 0)),
        ],
        out_specs=pl.BlockSpec((tr, tc), lambda i, j: (i, j)),
        compiler_params=pltpu.CompilerParams(
            dimension_semantics=("parallel", "parallel")),
    )(x2, s2, b2)
    return out.reshape(N, C, H, W)


# --------------------------------------------------------------------------
if __name__ == "__main__":
    key = jax.random.PRNGKey(0)
    k1, k2, k3, k4, k5, k6 = jax.random.split(key, 6)
    eps = 1e-5

    # Small shapes consistent with the module: batch=2, channels=4, spatial=16.
    N, C, H, W = 2, 4, 16, 16
    x = jax.random.normal(k1, (N, C, H, W), dtype=jnp.float32)
    weight = 1.0 + 0.1 * jax.random.normal(k2, (C,), dtype=jnp.float32)
    bias = 0.1 * jax.random.normal(k3, (C,), dtype=jnp.float32)
    running_mean = 0.2 * jax.random.normal(k4, (C,), dtype=jnp.float32)
    running_var = jnp.abs(jax.random.normal(k5, (C,), dtype=jnp.float32)) + 0.5

    out = frozen_batch_norm_2d(x, weight, bias, running_mean, running_var, eps)
    jax.block_until_ready(out)

    # Reference: exactly the PyTorch forward, in jnp.
    scale = weight * jax.lax.rsqrt(running_var + eps)
    shift = bias - running_mean * scale
    ref = x * scale[None, :, None, None] + shift[None, :, None, None]
    np.testing.assert_allclose(np.asarray(out), np.asarray(ref), rtol=1e-6, atol=1e-6)

    # Ragged case: rows not a multiple of 8, lanes not a multiple of 128, forced column
    # tiling (col_tile=128) so the kernel exercises multi-tile + partial-block masking.
    N2, C2, H2, W2 = 1, 5, 17, 19
    x2 = jax.random.normal(k6, (N2, C2, H2, W2), dtype=jnp.float32)
    w2 = jnp.linspace(0.5, 1.5, C2, dtype=jnp.float32)
    b2 = jnp.linspace(-0.3, 0.3, C2, dtype=jnp.float32)
    rm2 = jnp.linspace(-0.1, 0.1, C2, dtype=jnp.float32)
    rv2 = jnp.linspace(0.7, 1.3, C2, dtype=jnp.float32)
    out2 = frozen_batch_norm_2d(x2, w2, b2, rm2, rv2, eps, row_tile=8, col_tile=128)
    jax.block_until_ready(out2)
    scale2 = w2 * jax.lax.rsqrt(rv2 + eps)
    shift2 = b2 - rm2 * scale2
    ref2 = x2 * scale2[None, :, None, None] + shift2[None, :, None, None]
    np.testing.assert_allclose(np.asarray(out2), np.asarray(ref2), rtol=1e-6, atol=1e-6)

    print("KERNEL_OK")
</pallas_src>

<mosaic_0001>
module attributes {stable_mosaic.version = 11 : i64} {
  func.func @_frozen_bn_kernel(%arg0: i32, %arg1: i32, %arg2: memref<8x256xf32, #tpu.memory_space<vmem>>, %arg3: memref<8x1xf32, #tpu.memory_space<vmem>>, %arg4: memref<8x1xf32, #tpu.memory_space<vmem>>, %arg5: memref<8x256xf32, #tpu.memory_space<vmem>>) attributes {dimension_semantics = [#tpu.dimension_semantics<parallel>, #tpu.dimension_semantics<parallel>], iteration_bounds = array<i64: 1, 1>, scalar_prefetch = 0 : i64, scratch_operands = 0 : i64, tpu.core_type = #tpu.core_type<tc>, window_params = [{transform_indices = @transform_0, window_bounds = array<i64: 8, 256>}, {transform_indices = @transform_1, window_bounds = array<i64: 8, 1>}, {transform_indices = @transform_2, window_bounds = array<i64: 8, 1>}, {transform_indices = @transform_3, window_bounds = array<i64: 8, 256>}]} {
    %c0 = arith.constant 0 : index
    %c0_0 = arith.constant 0 : index
    %0 = vector.load %arg2[%c0, %c0_0] : memref<8x256xf32, #tpu.memory_space<vmem>>, vector<8x256xf32>
    %c0_1 = arith.constant 0 : index
    %c0_2 = arith.constant 0 : index
    %1 = vector.load %arg3[%c0_1, %c0_2] : memref<8x1xf32, #tpu.memory_space<vmem>>, vector<8x1xf32>
    %2 = vector.broadcast %1 : vector<8x1xf32> to vector<8x256xf32>
    %3 = arith.mulf %0, %2 : vector<8x256xf32>
    %c0_3 = arith.constant 0 : index
    %c0_4 = arith.constant 0 : index
    %4 = vector.load %arg4[%c0_3, %c0_4] : memref<8x1xf32, #tpu.memory_space<vmem>>, vector<8x1xf32>
    %5 = vector.broadcast %4 : vector<8x1xf32> to vector<8x256xf32>
    %6 = arith.addf %3, %5 : vector<8x256xf32>
    %c0_5 = arith.constant 0 : index
    %c0_6 = arith.constant 0 : index
    %7 = vector.load %arg5[%c0_5, %c0_6] : memref<8x256xf32, #tpu.memory_space<vmem>>, vector<8x256xf32>
    tpu.vector_store %arg5[%c0_5, %c0_6], %6 {strides = array<i32>} : memref<8x256xf32, #tpu.memory_space<vmem>>, vector<8x256xf32>,
    return
  }
  func.func @transform_0(%arg0: i32, %arg1: i32) -> (i32, i32) {
    %c0_i32 = arith.constant 0 : i32
    return %arg0, %arg1 : i32, i32
  }
  func.func @transform_1(%arg0: i32, %arg1: i32) -> (i32, i32) {
    %c0_i32 = arith.constant 0 : i32
    %c0_i32_0 = arith.constant 0 : i32
    return %arg0, %c0_i32 : i32, i32
  }
  func.func @transform_2(%arg0: i32, %arg1: i32) -> (i32, i32) {
    %c0_i32 = arith.constant 0 : i32
    %c0_i32_0 = arith.constant 0 : i32
    return %arg0, %c0_i32 : i32, i32
  }
  func.func @transform_3(%arg0: i32, %arg1: i32) -> (i32, i32) {
    %c0_i32 = arith.constant 0 : i32
    return %arg0, %arg1 : i32, i32
  }
}

</mosaic_0001>

<bundles_post_ra>
// kernel: tpu_custom_call.1
= control target key start
LH: loop header
LB: loop body
LE: loop exit
PB: predicated region body
PF: predicated region fallthrough
CT: control target
= control target key end

     0   :  { %v74_v1 = vmov 0   ;;  %s111_s0 = inlined_call_operand.vmem [shape: f32[8,256], index: 0, kind: input, shape index: {}]   ;;  %s112_s1 = inlined_call_operand.vmem [shape: f32[8,1], index: 1, kind: input, shape index: {}]   ;;  %s113_s2 = inlined_call_operand.vmem [shape: f32[8,1], index: 2, kind: input, shape index: {}]   ;;  %s114_s3 = inlined_call_operand.hbm [shape: f32[8,256], index: 3, kind: output, shape index: {}]  }
   0x1   :  { %v17_v0 = vld [vmem:[%s112_s1] sm:$0xff]  ;;  %51 = vset.pattern.permute.xlu0 %v74_v1 }
   0x2   :  { %8 = vsyncpa [#allocation3], 0  ;;  %20 = vperm.xlu0 %51, %v17_v0   ;;  %v25_v2 = vld [vmem:[%s113_s2] sm:$0xff]  ;;  %v16_v5 = vld [vmem:[%s111_s0 + $0x8] sm:$0xff]  ;;  %s75_s20 = smov [#allocation2]  }
   0x3   :  { %v15_v4 = vld [vmem:[%s111_s0] sm:$0xff]  ;;  %s41_s1 = sshll.u32 %s75_s20, 4  ;;  %s42_s1 = int_to_ptr.vmem [resolvable:$true] %s41_s1 }
   0x4   :  { %s52_s2 = scalar_lea.vmem %s42_s1, 256  ;;  %p57_p1 = scmp.lt.s32.totalorder %s42_s1, %s42_s1 }
   0x5   :  { %p53_p0 = scmp.ne.s32.totalorder %s42_s1, %s52_s2  ;;  %p58_p2 = scmp.lt.s32.totalorder %s52_s2, %s52_s2 }
   0x6   :  { %28 = vperm.xlu0 %51, %v25_v2  }
   0x7   :  { %p59_p3 = por %p58_p2, %p57_p1 }
   0x9   :  { %p60_p4 = pnand %p59_p3, %p53_p0 }
  0x7d   :  { %v21_v3 = vpop.permute.xlu0 %20 }
  0x7e   :  { %v23_v6 = vmul.f32 %v21_v3, %v15_v4  ;;  %v24_v7 = vmul.f32 %v21_v3, %v16_v5 }
  0x81   :  { %v29_v8 = vpop.permute.xlu0 %28 }
  0x82   :  { %v31_v9 = vadd.f32 %v29_v8, %v23_v6  ;;  %v32_v10 = vadd.f32 %v29_v8, %v24_v7 }
  0x84   :  { %33 = vst [vmem:[#allocation2] sm:$0xff] %v31_v9  ;;  %34 = vst [vmem:[#allocation2 + $0x8] sm:$0xff] %v32_v10 }
  0x85   :  { %63 = shalt.err (!%p60_p4)
}
  0x86   :  { %44 = dma.vmem_to_hbm [thread:$0]  %s42_s1, 256, %s114_s3, [#allocation3]  }
  0x87   :  { %72 = dma.done.wait [#allocation3], 256  }
  0x88   :  { %73 = vsyncadd [#allocation3], 4294967040 }
  0x89   :  { %48 = vsyncpa [#allocation3], 1 }

</bundles_post_ra>
